<compile_context>
chip_gen: v5e
topology: v5e:2x2
jax: 0.10.0
libtpu: 0.0.40
codegen_flags: <defaults>
</compile_context>

<pallas_src>
import jax
import jax.numpy as jnp
from jax.experimental import pallas as pl
from jax.experimental.pallas import tpu as pltpu


# Flat parameter layout (all f32):
#   p[j]      = w1[0, j]   j = 0..4   (input feature 0 -> hidden j)
#   p[5 + j]  = w1[1, j]   j = 0..4   (input feature 1 -> hidden j)
#   p[10 + j] = b1[j]      j = 0..4
#   p[15 + j] = w2[j, 0]   j = 0..4   (hidden j -> output)
#   p[20]     = b2
def _mlp_kernel(p_ref, x_ref, o_ref):
    # x_ref: [2, TN] (features on sublanes, batch on lanes)
    x0 = x_ref[0:1, :]                      # (1, TN)
    x1 = x_ref[1:2, :]                      # (1, TN)

    # Hidden unit 0 seeds the output accumulator (plus the output bias).
    h = jnp.maximum(x0 * p_ref[0] + x1 * p_ref[5] + p_ref[10], 0.0)
    y = h * p_ref[15] + p_ref[20]
    # Remaining 4 hidden units, fully unrolled: pure VPU broadcast-FMAs.
    for j in range(1, 5):
        h = jnp.maximum(x0 * p_ref[j] + x1 * p_ref[5 + j] + p_ref[10 + j], 0.0)
        y = y + h * p_ref[15 + j]

    o_ref[...] = y.astype(o_ref.dtype)      # (1, TN) lane-dense store


def my_machine_forward(x, w1, b1, w2, b2, *, tile_n=512):
    """x: [N, 2] f32 -> [N, 1] f32 (same math as Linear(2,5)+ReLU+Linear(5,1))."""
    n = x.shape[0]
    n_pad = pl.cdiv(n, tile_n) * tile_n

    # Transposed, lane-padded input: [2, N_pad]. Padding lanes are sliced off.
    x_t = jnp.zeros((2, n_pad), x.dtype).at[:, :n].set(x.T)

    # Single packed parameter vector, held in SMEM inside the kernel.
    params = jnp.concatenate(
        [w1.reshape(-1), b1.reshape(-1), w2.reshape(-1), b2.reshape(-1)]
    ).astype(jnp.float32)

    out_t = pl.pallas_call(
        _mlp_kernel,
        out_shape=jax.ShapeDtypeStruct((1, n_pad), x.dtype),
        grid=(n_pad // tile_n,),
        in_specs=[
            pl.BlockSpec(memory_space=pltpu.MemorySpace.SMEM),     # packed params
            pl.BlockSpec((2, tile_n), lambda i: (0, i)),           # x tile
        ],
        out_specs=pl.BlockSpec((1, tile_n), lambda i: (0, i)),
        compiler_params=pltpu.CompilerParams(
            dimension_semantics=("parallel",),   # v7x: 2 TCs split the batch
        ),
    )(params, x_t)

    return out_t[0, :n].reshape(n, 1)


def init_params(key):
    """Deterministic init mirroring nn.Linear's U(-1/sqrt(fan_in), 1/sqrt(fan_in))."""
    k1, k2, k3, k4 = jax.random.split(key, 4)
    bound1 = 1.0 / jnp.sqrt(2.0)   # fan_in = 2
    bound2 = 1.0 / jnp.sqrt(5.0)   # fan_in = 5
    w1 = jax.random.uniform(k1, (2, 5), jnp.float32, -bound1, bound1)
    b1 = jax.random.uniform(k2, (1, 5), jnp.float32, -bound1, bound1)
    w2 = jax.random.uniform(k3, (5, 1), jnp.float32, -bound2, bound2)
    b2 = jax.random.uniform(k4, (1, 1), jnp.float32, -bound2, bound2)
    return w1, b1, w2, b2


if __name__ == "__main__":
    key = jax.random.PRNGKey(0)
    kx, kp = jax.random.split(key)

    # Small batch, feature dim 2 as implied by Linear(2, 5).
    # TODO(synk): at N this small plain XLA fusion beats any custom kernel;
    # the Pallas path is written for when N scales to thousands+.
    x = jax.random.normal(kx, (8, 2), jnp.float32)
    w1, b1, w2, b2 = init_params(kp)

    out = my_machine_forward(x, w1, b1, w2, b2)
    out = jax.block_until_ready(out)

    # Sanity check against a pure-JAX reference of the same math.
    ref = jnp.maximum(x @ w1 + b1, 0.0) @ w2 + b2
    assert out.shape == (8, 1)
    assert jnp.allclose(out, ref, atol=1e-5, rtol=1e-5), (out, ref)

    print("KERNEL_OK")
</pallas_src>

<mosaic_0001>
module attributes {stable_mosaic.version = 11 : i64} {
  func.func @_mlp_kernel(%arg0: i32, %arg1: memref<21xf32, #tpu.memory_space<smem>>, %arg2: memref<2x512xf32, #tpu.memory_space<vmem>>, %arg3: memref<1x512xf32, #tpu.memory_space<vmem>>) attributes {dimension_semantics = [#tpu.dimension_semantics<parallel>], iteration_bounds = array<i64: 1>, scalar_prefetch = 0 : i64, scratch_operands = 0 : i64, tpu.core_type = #tpu.core_type<tc>, window_params = [{transform_indices = @transform_0, window_bounds = array<i64: 21>}, {transform_indices = @transform_1, window_bounds = array<i64: 2, 512>}, {transform_indices = @transform_2, window_bounds = array<i64: 1, 512>}]} {
    %c0 = arith.constant 0 : index
    %c0_0 = arith.constant 0 : index
    %0 = vector.load %arg2[%c0, %c0_0] : memref<2x512xf32, #tpu.memory_space<vmem>>, vector<1x512xf32>
    %c1 = arith.constant 1 : index
    %c0_1 = arith.constant 0 : index
    %1 = vector.load %arg2[%c1, %c0_1] : memref<2x512xf32, #tpu.memory_space<vmem>>, vector<1x512xf32>
    %c0_2 = arith.constant 0 : index
    %2 = memref.load %arg1[%c0_2] : memref<21xf32, #tpu.memory_space<smem>>
    %3 = vector.broadcast %2 : f32 to vector<1x512xf32>
    %4 = arith.mulf %0, %3 : vector<1x512xf32>
    %c5 = arith.constant 5 : index
    %5 = memref.load %arg1[%c5] : memref<21xf32, #tpu.memory_space<smem>>
    %6 = vector.broadcast %5 : f32 to vector<1x512xf32>
    %7 = arith.mulf %1, %6 : vector<1x512xf32>
    %8 = arith.addf %4, %7 : vector<1x512xf32>
    %c10 = arith.constant 10 : index
    %9 = memref.load %arg1[%c10] : memref<21xf32, #tpu.memory_space<smem>>
    %10 = vector.broadcast %9 : f32 to vector<1x512xf32>
    %11 = arith.addf %8, %10 : vector<1x512xf32>
    %cst = arith.constant 0.000000e+00 : f32
    %12 = vector.broadcast %cst : f32 to vector<1x512xf32>
    %13 = arith.maximumf %11, %12 : vector<1x512xf32>
    %c15 = arith.constant 15 : index
    %14 = memref.load %arg1[%c15] : memref<21xf32, #tpu.memory_space<smem>>
    %15 = vector.broadcast %14 : f32 to vector<1x512xf32>
    %16 = arith.mulf %13, %15 : vector<1x512xf32>
    %c20 = arith.constant 20 : index
    %17 = memref.load %arg1[%c20] : memref<21xf32, #tpu.memory_space<smem>>
    %18 = vector.broadcast %17 : f32 to vector<1x512xf32>
    %19 = arith.addf %16, %18 : vector<1x512xf32>
    %c1_3 = arith.constant 1 : index
    %20 = memref.load %arg1[%c1_3] : memref<21xf32, #tpu.memory_space<smem>>
    %21 = vector.broadcast %20 : f32 to vector<1x512xf32>
    %22 = arith.mulf %0, %21 : vector<1x512xf32>
    %c6 = arith.constant 6 : index
    %23 = memref.load %arg1[%c6] : memref<21xf32, #tpu.memory_space<smem>>
    %24 = vector.broadcast %23 : f32 to vector<1x512xf32>
    %25 = arith.mulf %1, %24 : vector<1x512xf32>
    %26 = arith.addf %22, %25 : vector<1x512xf32>
    %c11 = arith.constant 11 : index
    %27 = memref.load %arg1[%c11] : memref<21xf32, #tpu.memory_space<smem>>
    %28 = vector.broadcast %27 : f32 to vector<1x512xf32>
    %29 = arith.addf %26, %28 : vector<1x512xf32>
    %cst_4 = arith.constant 0.000000e+00 : f32
    %30 = vector.broadcast %cst_4 : f32 to vector<1x512xf32>
    %31 = arith.maximumf %29, %30 : vector<1x512xf32>
    %c16 = arith.constant 16 : index
    %32 = memref.load %arg1[%c16] : memref<21xf32, #tpu.memory_space<smem>>
    %33 = vector.broadcast %32 : f32 to vector<1x512xf32>
    %34 = arith.mulf %31, %33 : vector<1x512xf32>
    %35 = arith.addf %19, %34 : vector<1x512xf32>
    %c2 = arith.constant 2 : index
    %36 = memref.load %arg1[%c2] : memref<21xf32, #tpu.memory_space<smem>>
    %37 = vector.broadcast %36 : f32 to vector<1x512xf32>
    %38 = arith.mulf %0, %37 : vector<1x512xf32>
    %c7 = arith.constant 7 : index
    %39 = memref.load %arg1[%c7] : memref<21xf32, #tpu.memory_space<smem>>
    %40 = vector.broadcast %39 : f32 to vector<1x512xf32>
    %41 = arith.mulf %1, %40 : vector<1x512xf32>
    %42 = arith.addf %38, %41 : vector<1x512xf32>
    %c12 = arith.constant 12 : index
    %43 = memref.load %arg1[%c12] : memref<21xf32, #tpu.memory_space<smem>>
    %44 = vector.broadcast %43 : f32 to vector<1x512xf32>
    %45 = arith.addf %42, %44 : vector<1x512xf32>
    %cst_5 = arith.constant 0.000000e+00 : f32
    %46 = vector.broadcast %cst_5 : f32 to vector<1x512xf32>
    %47 = arith.maximumf %45, %46 : vector<1x512xf32>
    %c17 = arith.constant 17 : index
    %48 = memref.load %arg1[%c17] : memref<21xf32, #tpu.memory_space<smem>>
    %49 = vector.broadcast %48 : f32 to vector<1x512xf32>
    %50 = arith.mulf %47, %49 : vector<1x512xf32>
    %51 = arith.addf %35, %50 : vector<1x512xf32>
    %c3 = arith.constant 3 : index
    %52 = memref.load %arg1[%c3] : memref<21xf32, #tpu.memory_space<smem>>
    %53 = vector.broadcast %52 : f32 to vector<1x512xf32>
    %54 = arith.mulf %0, %53 : vector<1x512xf32>
    %c8 = arith.constant 8 : index
    %55 = memref.load %arg1[%c8] : memref<21xf32, #tpu.memory_space<smem>>
    %56 = vector.broadcast %55 : f32 to vector<1x512xf32>
    %57 = arith.mulf %1, %56 : vector<1x512xf32>
    %58 = arith.addf %54, %57 : vector<1x512xf32>
    %c13 = arith.constant 13 : index
    %59 = memref.load %arg1[%c13] : memref<21xf32, #tpu.memory_space<smem>>
    %60 = vector.broadcast %59 : f32 to vector<1x512xf32>
    %61 = arith.addf %58, %60 : vector<1x512xf32>
    %cst_6 = arith.constant 0.000000e+00 : f32
    %62 = vector.broadcast %cst_6 : f32 to vector<1x512xf32>
    %63 = arith.maximumf %61, %62 : vector<1x512xf32>
    %c18 = arith.constant 18 : index
    %64 = memref.load %arg1[%c18] : memref<21xf32, #tpu.memory_space<smem>>
    %65 = vector.broadcast %64 : f32 to vector<1x512xf32>
    %66 = arith.mulf %63, %65 : vector<1x512xf32>
    %67 = arith.addf %51, %66 : vector<1x512xf32>
    %c4 = arith.constant 4 : index
    %68 = memref.load %arg1[%c4] : memref<21xf32, #tpu.memory_space<smem>>
    %69 = vector.broadcast %68 : f32 to vector<1x512xf32>
    %70 = arith.mulf %0, %69 : vector<1x512xf32>
    %c9 = arith.constant 9 : index
    %71 = memref.load %arg1[%c9] : memref<21xf32, #tpu.memory_space<smem>>
    %72 = vector.broadcast %71 : f32 to vector<1x512xf32>
    %73 = arith.mulf %1, %72 : vector<1x512xf32>
    %74 = arith.addf %70, %73 : vector<1x512xf32>
    %c14 = arith.constant 14 : index
    %75 = memref.load %arg1[%c14] : memref<21xf32, #tpu.memory_space<smem>>
    %76 = vector.broadcast %75 : f32 to vector<1x512xf32>
    %77 = arith.addf %74, %76 : vector<1x512xf32>
    %cst_7 = arith.constant 0.000000e+00 : f32
    %78 = vector.broadcast %cst_7 : f32 to vector<1x512xf32>
    %79 = arith.maximumf %77, %78 : vector<1x512xf32>
    %c19 = arith.constant 19 : index
    %80 = memref.load %arg1[%c19] : memref<21xf32, #tpu.memory_space<smem>>
    %81 = vector.broadcast %80 : f32 to vector<1x512xf32>
    %82 = arith.mulf %79, %81 : vector<1x512xf32>
    %83 = arith.addf %67, %82 : vector<1x512xf32>
    %c0_8 = arith.constant 0 : index
    %c0_9 = arith.constant 0 : index
    %84 = vector.load %arg3[%c0_8, %c0_9] : memref<1x512xf32, #tpu.memory_space<vmem>>, vector<1x512xf32>
    tpu.vector_store %arg3[%c0_8, %c0_9], %83 {strides = array<i32>} : memref<1x512xf32, #tpu.memory_space<vmem>>, vector<1x512xf32>,
    return
  }
  func.func @transform_0(%arg0: i32) -> i32 {
    %c0_i32 = arith.constant 0 : i32
    %c0_i32_0 = arith.constant 0 : i32
    return %c0_i32 : i32
  }
  func.func @transform_1(%arg0: i32) -> (i32, i32) {
    %c0_i32 = arith.constant 0 : i32
    %c0_i32_0 = arith.constant 0 : i32
    return %c0_i32, %arg0 : i32, i32
  }
  func.func @transform_2(%arg0: i32) -> (i32, i32) {
    %c0_i32 = arith.constant 0 : i32
    %c0_i32_0 = arith.constant 0 : i32
    return %c0_i32, %arg0 : i32, i32
  }
}

</mosaic_0001>

<bundles_post_ra>
// kernel: tpu_custom_call.1
= control target key start
LH: loop header
LB: loop body
LE: loop exit
PB: predicated region body
PF: predicated region fallthrough
CT: control target
= control target key end

     0   :  { %7 = vsyncpa [#allocation5], 0  ;;  %s279_s0 = inlined_call_operand.hbm [shape: f32[21], index: 0, kind: input, shape index: {}]   ;;  %s280_s1 = inlined_call_operand.hbm [shape: f32[2,512], index: 1, kind: input, shape index: {}]   ;;  %s281_s2 = inlined_call_operand.hbm [shape: f32[1,512], index: 2, kind: output, shape index: {}]  }
   0x1   :  { %8 = vsyncpa [#allocation3], 0 }
   0x2   :  { %9 = vsyncpa [#allocation4], 0  ;;  %s15_s11 = sshll.u32 %s279_s0, 4  ;;  %s24_s14 = sshll.u32 %s280_s1, 4  ;;  %s16_s11 = int_to_ptr.hbm [resolvable:$true] %s15_s11  ;;  %s25_s14 = int_to_ptr.hbm [resolvable:$true] %s24_s14 }
   0x3   :  { %s231_s15 = smov [#allocation2]   ;;  %s232_s16 = smov [#allocation6]  }
   0x4   :  { %18 = dma.hbm_to_smem %s16_s11, 16, %s231_s15, [#allocation5]  }
   0x5   :  { %s26_s17 = sshll.u32 %s232_s16, 4  ;;  %s27_s17 = int_to_ptr.vmem [resolvable:$true] %s26_s17 }
   0x6   :  { %29 = dma.hbm_to_vmem [thread:$0]  %s25_s14, 128, %s27_s17, [#allocation3]  }
   0x7   :  { %225 = dma.done.wait [#allocation5], 16  }
   0x8   :  { %226 = vsyncadd [#allocation5], 4294967280 }
   0x9   :  { %227 = dma.done.wait [#allocation3], 128  }
   0xa   :  { %228 = vsyncadd [#allocation3], 4294967168 }
   0xb   :  { %38 = sfence }
   0xc   :  { %s42_s18 = sld [smem:[#allocation2]]  ;;  %v39_v0 = vld [vmem:[#allocation6] ss:$2 sm:$0xf]  ;;  %v119_v54 = vlaneseq  ;;  %s233_s9 = smov [#allocation7]  }
   0xd   :  { %s142_s19 = sld [smem:[#allocation2 + $0x5]]  ;;  %v41_v1 = vld [vmem:[#allocation6 + $0x1] ss:$2 sm:$0xf]  ;;  %s129_s10 = sshll.u32 %s233_s9, 4  ;;  %s130_s10 = int_to_ptr.vmem [resolvable:$true] %s129_s10 }
   0xe   :  { %s143_s0 = sld [smem:[#allocation2 + $0xa]]  ;;  %s131_s13 = sshll.u32 %s281_s2, 4  ;;  %vm121_vm0 = vcmp.lt.s32.totalorder %v119_v54, 512  ;;  %s132_s13 = int_to_ptr.hbm [resolvable:$true] %s131_s13 }
   0xf   :  { %s255_s20 = sld [smem:[#allocation2 + $0xf]] }
  0x10   :  { %s257_s21 = sld [smem:[#allocation2 + $0x14]] }
  0x11   :  { %s146_s1 = sld [smem:[#allocation2 + $0x1]] }
  0x12   :  { %v43_v2 = vstv %s42_s18  ;;  %s147_s22 = sld [smem:[#allocation2 + $0x6]] }
  0x13   :  { %v44_v3 = vmul.f32 %v43_v2, %v39_v0  ;;  %v46_v4 = vstv %s142_s19  ;;  %s148_s23 = sld [smem:[#allocation2 + $0xb]] }
  0x14   :  { %v47_v5 = vmul.f32 %v46_v4, %v41_v1  ;;  %s259_s24 = sld [smem:[#allocation2 + $0x10]]  ;;  %v50_v6 = vstv %s143_s0 }
  0x15   :  { %s150_s25 = sld [smem:[#allocation2 + $0x2]]  ;;  %v54_v12 = vstv %s255_s20 }
  0x16   :  { %v48_v7 = vadd.f32 %v47_v5, %v44_v3  ;;  %s151_s26 = sld [smem:[#allocation2 + $0x7]]  ;;  %v57_v19 = vstv %s257_s21 }
  0x17   :  { %v60_v8 = vstv %s146_s1  ;;  %s261_s27 = sld [smem:[#allocation2 + $0xc]] }
  0x18   :  { %v51_v9 = vadd.f32 %v50_v6, %v48_v7  ;;  %v61_v10 = vmul.f32 %v60_v8, %v39_v0  ;;  %v63_v11 = vstv %s147_s22  ;;  %s263_s28 = sld [smem:[#allocation2 + $0x11]] }
  0x19   :  { %v64_v13 = vmul.f32 %v63_v11, %v41_v1  ;;  %s154_s29 = sld [smem:[#allocation2 + $0x3]]  ;;  %v67_v15 = vstv %s148_s23 }
  0x1a   :  { %v52_v14 = vmax.f32 %v51_v9, 0.0  ;;  %s155_s30 = sld [smem:[#allocation2 + $0x8]]  ;;  %v71_v24 = vstv %s259_s24 }
  0x1b   :  { %v65_v16 = vadd.f32 %v64_v13, %v61_v10  ;;  %v75_v17 = vstv %s150_s25  ;;  %s266_s3 = sld [smem:[#allocation2 + $0xd]] }
  0x1c   :  { %v55_v18 = vmul.f32 %v54_v12, %v52_v14  ;;  %v76_v20 = vmul.f32 %v75_v17, %v39_v0  ;;  %v78_v21 = vstv %s151_s26  ;;  %s269_s4 = sld [smem:[#allocation2 + $0x12]] }
  0x1d   :  { %v68_v22 = vadd.f32 %v67_v15, %v65_v16  ;;  %v79_v23 = vmul.f32 %v78_v21, %v41_v1  ;;  %s158_s5 = sld [smem:[#allocation2 + $0x4]]  ;;  %v82_v25 = vstv %s261_s27 }
  0x1e   :  { %s159_s6 = sld [smem:[#allocation2 + $0x9]]  ;;  %v58_v26 = vadd.f32 %v57_v19, %v55_v18  ;;  %v86_v35 = vstv %s263_s28 }
  0x1f   :  { %v69_v27 = vmax.f32 %v68_v22, 0.0  ;;  %v80_v28 = vadd.f32 %v79_v23, %v76_v20  ;;  %v90_v29 = vstv %s154_s29  ;;  %s160_s7 = sld [smem:[#allocation2 + $0xe]] }
  0x20   :  { %v91_v30 = vmul.f32 %v90_v29, %v39_v0  ;;  %v93_v31 = vstv %s155_s30  ;;  %s161_s8 = sld [smem:[#allocation2 + $0x13]] }
  0x21   :  { %v72_v32 = vmul.f32 %v71_v24, %v69_v27  ;;  %v83_v33 = vadd.f32 %v82_v25, %v80_v28  ;;  %v94_v34 = vmul.f32 %v93_v31, %v41_v1  ;;  %v97_v36 = vstv %s266_s3 }
  0x22   :  { %v101_v46 = vstv %s269_s4 }
  0x23   :  { %v73_v37 = vadd.f32 %v72_v32, %v58_v26  ;;  %v84_v38 = vmax.f32 %v83_v33, 0.0  ;;  %v95_v39 = vadd.f32 %v94_v34, %v91_v30  ;;  %v105_v40 = vstv %s158_s5 }
  0x24   :  { %v106_v41 = vmul.f32 %v105_v40, %v39_v0  ;;  %v108_v42 = vstv %s159_s6 }
  0x25   :  { %v87_v43 = vmul.f32 %v86_v35, %v84_v38  ;;  %v98_v44 = vadd.f32 %v97_v36, %v95_v39  ;;  %v109_v45 = vmul.f32 %v108_v42, %v41_v1  ;;  %v112_v47 = vstv %s160_s7 }
  0x26   :  { %v116_v53 = vstv %s161_s8 }
  0x27   :  { %v88_v48 = vadd.f32 %v87_v43, %v73_v37  ;;  %v99_v49 = vmax.f32 %v98_v44, 0.0  ;;  %v110_v50 = vadd.f32 %v109_v45, %v106_v41 }
  0x29   :  { %v102_v51 = vmul.f32 %v101_v46, %v99_v49  ;;  %v113_v52 = vadd.f32 %v112_v47, %v110_v50 }
  0x2b   :  { %v103_v55 = vadd.f32 %v102_v51, %v88_v48  ;;  %v114_v56 = vmax.f32 %v113_v52, 0.0 }
  0x2d   :  { %v117_v57 = vmul.f32 %v116_v53, %v114_v56 }
  0x2f   :  { %v118_v58 = vadd.f32 %v117_v57, %v103_v55 }
  0x31   :  { %123 = vst.msk [vmem:[#allocation7] sm:$0xf] %vm121_vm0, %v118_v58 }
  0x32   :  { %134 = dma.vmem_to_hbm [thread:$0]  %s130_s10, 64, %s132_s13, [#allocation4]  }
  0x33   :  { %229 = dma.done.wait [#allocation4], 64  }
  0x34   :  { %230 = vsyncadd [#allocation4], 4294967232 }
  0x35   :  { %139 = vsyncpa [#allocation3], 1 }
  0x36   :  { %140 = vsyncpa [#allocation4], 1 }
  0x37   :  { %141 = vsyncpa [#allocation5], 1 }

</bundles_post_ra>
